<compile_context>
chip_gen: v7x
topology: tpu7x:2x2x1
jax: 0.10.0
libtpu: 0.0.40
codegen_flags: <defaults>
</compile_context>

<pallas_src>
import functools

import jax
import jax.numpy as jnp
from jax.experimental import pallas as pl
from jax.experimental.pallas import tpu as pltpu


def _round_up(x, m):
    return ((x + m - 1) // m) * m


def _vmem_capacity_bytes():
    try:
        return int(pltpu.get_tpu_info().vmem_capacity_bytes)
    except Exception:  # interpret mode / older runtimes
        return 128 * 1024 * 1024


# ----------------------------------------------------------------------------
# Kernel 1: _pool_bert_layers
#   per comment m: for each of L layers, masked mean over seq, then mean over L
#   implemented as: sum over (L, S) of hs*mask, then / (L * token_count)
# ----------------------------------------------------------------------------
def pool_kernel(hs_ref, mask_ref, out_ref, acc_ref, *, num_layers):
    l = pl.program_id(1)

    @pl.when(l == 0)
    def _init():
        acc_ref[...] = jnp.zeros_like(acc_ref)

    hs = hs_ref[...].astype(jnp.float32)          # (TM, S, H); f32 accumulate
    mk = mask_ref[...][:, :, None]                # (TM, S) -> (TM, S, 1)
    acc_ref[...] += jnp.sum(hs * mk, axis=1)      # masked token-sum -> (TM, H)

    @pl.when(l == num_layers - 1)
    def _finalize():
        cnt = jnp.maximum(jnp.sum(mask_ref[...], axis=1, keepdims=True),
                          jnp.float32(1e-9))                       # (TM, 1)
        # exact divide: runs once per m tile, fully hidden under streaming DMA
        out_ref[...] = (acc_ref[...] /
                        (cnt * jnp.float32(num_layers))).astype(out_ref.dtype)


def pool_bert_layers(hidden_states, token_mask, *, tm=None):
    """hidden_states: (L, M, S, H) bf16/f32; token_mask: (M, S) f32 -> (M, H) f32."""
    L, M, S, H = hidden_states.shape
    itemsize = jnp.dtype(hidden_states.dtype).itemsize

    capacity = _vmem_capacity_bytes()
    if capacity >= 96 * 1024 * 1024:      # v5e / v6e: 128 MiB physical VMEM
        vmem_target = 100 * 1024 * 1024
    else:                                  # v7x: 64 MiB physical VMEM
        vmem_target = 48 * 1024 * 1024
    headroom = 4 * 1024 * 1024             # Mosaic internal scratch, alignment

    Hp = _round_up(H, 128)
    # physical VMEM bytes per comment row (tm is a multiple of 8):
    #   2x double-buffered hs slab, 2x (tm,S) mask block, 2x (tm,H) out block,
    #   (tm,H) f32 accumulator, plus an allowance for the in-kernel f32 vector
    #   temporaries (upcast hs, broadcast mask, masked product).
    per_row = (2 * _round_up(S, 16) * Hp * itemsize      # hs, double-buffered
               + 2 * _round_up(S, 128) * 4               # mask, double-buffered
               + 2 * Hp * 4                              # out, double-buffered
               + 1 * Hp * 4                              # f32 accumulator
               + 3 * _round_up(S, 8) * Hp * 4)           # compute temporaries

    if tm is None:
        tm = (vmem_target - headroom) // per_row
    tm = int(max(8, min(512, (int(tm) // 8) * 8)))
    tm = min(tm, _round_up(M, 8))
    if M > 8:
        # keep >= 2 parallel m tiles so both v7x TensorCores get work
        tm = min(tm, _round_up(pl.cdiv(M, 2), 8))
    tm = max(8, (tm // 8) * 8)

    Mp = pl.cdiv(M, tm) * tm
    if Mp != M:  # pad the comment axis so tm tiles cover it exactly
        hidden_states = jnp.pad(hidden_states,
                                ((0, 0), (0, Mp - M), (0, 0), (0, 0)))
        token_mask = jnp.pad(token_mask, ((0, Mp - M), (0, 0)))

    need = per_row * tm
    vmem_limit = int(min(vmem_target, max(32 * 1024 * 1024, need + headroom)))

    out = pl.pallas_call(
        functools.partial(pool_kernel, num_layers=L),
        out_shape=jax.ShapeDtypeStruct((Mp, H), jnp.float32),
        grid_spec=pltpu.PrefetchScalarGridSpec(
            num_scalar_prefetch=0,
            grid=(Mp // tm, L),                 # L innermost = reduction axis
            in_specs=[
                pl.BlockSpec((None, tm, S, H), lambda m, l: (l, m, 0, 0)),
                pl.BlockSpec((tm, S), lambda m, l: (m, 0)),
            ],
            out_specs=pl.BlockSpec((tm, H), lambda m, l: (m, 0)),
            scratch_shapes=[pltpu.VMEM((tm, H), jnp.float32)],
        ),
        compiler_params=pltpu.CompilerParams(
            dimension_semantics=("parallel", "arbitrary"),
            vmem_limit_bytes=vmem_limit,
        ),
    )(hidden_states, token_mask)
    return out[:M]


# ----------------------------------------------------------------------------
# Kernel 2: comment attention + CORAL trait classifier heads (TB batches/step)
#   u = tanh(emb @ Wa + ba); scores = sum(u*va); mask; softmax over comments;
#   agg = sum(w * emb); logits = agg @ Wc + bc
# ----------------------------------------------------------------------------
def head_kernel(emb_ref, act_ref, wa_ref, ba_ref, va_ref, wc_ref, bc_ref, out_ref):
    emb = emb_ref[...].astype(jnp.float32)        # (N, TB, H), comment-major
    n_comments, tb, h = emb.shape
    emb2d = emb.reshape(n_comments * tb, h)       # layout-free merge (tb % 8 == 0)

    # single fused MXU matmul for the attention hidden layer
    u = jnp.tanh(jnp.dot(emb2d, wa_ref[...],
                         preferred_element_type=jnp.float32) + ba_ref[...])
    # scores via VPU multiply + lane reduce (an (A,1) MXU matmul would waste
    # the 128/256-wide array)
    s = jnp.sum(u * va_ref[...], axis=-1, keepdims=True)         # (N*TB, 1)
    s = s.reshape(n_comments, tb, 1)                              # layout-free split

    act = act_ref[...]                                            # (N, TB, 1)
    s = jnp.where(act > 0.5, s, jnp.float32(-1e9))

    # softmax over comments = reduction over the leading axis (pure VPU)
    m = jnp.max(s, axis=0, keepdims=True)
    e = jnp.exp(s - m)
    w = e * pl.reciprocal(jnp.sum(e, axis=0, keepdims=True), approx=True)

    agg = jnp.sum(w * emb, axis=0)                                # (TB, H)
    # dropout is identity in eval mode
    out_ref[...] = (jnp.dot(agg, wc_ref[...],
                            preferred_element_type=jnp.float32) + bc_ref[...])


def attention_and_classify(comment_emb, active_mask, wa, ba, va, wc, bc, *, tb=256):
    """comment_emb: (B, N, H) f32; active_mask: (B, N) -> logits (B, T*(K-1))."""
    B, N, H = comment_emb.shape
    A = wa.shape[1]
    TK = wc.shape[1]

    # lane-dense output: pad the classifier out-dim up to a multiple of 128
    TKp = max(128, _round_up(TK, 128))
    if TKp != TK:
        wc = jnp.pad(wc, ((0, 0), (0, TKp - TK)))
        bc = jnp.pad(bc, ((0, 0), (0, TKp - TK)))

    # tile of batches per grid step (multiple of 8)
    tb = max(8, min((int(tb) // 8) * 8, _round_up(B, 8)))
    Bp = pl.cdiv(B, tb) * tb
    if Bp != B:
        comment_emb = jnp.pad(comment_emb, ((0, Bp - B), (0, 0), (0, 0)))
        active_mask = jnp.pad(active_mask, ((0, Bp - B), (0, 0)))

    # comment-major plumbing: (N, Bp, H) blocks are sublane/lane-dense per
    # comment (no N=3 -> 8 sublane padding inside the kernel)
    emb_nbh = jnp.transpose(comment_emb, (1, 0, 2))               # (N, Bp, H)
    act_nb1 = jnp.transpose(active_mask, (1, 0))[..., None]       # (N, Bp, 1)
    va_row = va.reshape(1, A)                                     # lane-reduce form

    out = pl.pallas_call(
        head_kernel,
        out_shape=jax.ShapeDtypeStruct((Bp, TKp), jnp.float32),
        grid_spec=pltpu.PrefetchScalarGridSpec(
            num_scalar_prefetch=0,
            grid=(Bp // tb,),
            in_specs=[
                pl.BlockSpec((N, tb, H), lambda b: (0, b, 0)),
                pl.BlockSpec((N, tb, 1), lambda b: (0, b, 0)),
                pl.BlockSpec((H, A), lambda b: (0, 0)),
                pl.BlockSpec((1, A), lambda b: (0, 0)),
                pl.BlockSpec((1, A), lambda b: (0, 0)),
                pl.BlockSpec((H, TKp), lambda b: (0, 0)),
                pl.BlockSpec((1, TKp), lambda b: (0, 0)),
            ],
            out_specs=pl.BlockSpec((tb, TKp), lambda b: (b, 0)),
        ),
        compiler_params=pltpu.CompilerParams(dimension_semantics=("parallel",)),
    )(emb_nbh, act_nb1, wa, ba, va_row, wc, bc)
    return out[:B, :TK]


# ----------------------------------------------------------------------------
# Full forward (glue in plain JAX)
# ----------------------------------------------------------------------------
def personality_model_v2_forward(hidden_states, token_mask, active_mask, params,
                                 batch_size, n_comments):
    """hidden_states: (L, B*N, S, H); token_mask: (B*N, S); active_mask: (B, N)."""
    emb_flat = pool_bert_layers(hidden_states, token_mask)          # (M, H)
    H = emb_flat.shape[-1]
    comment_emb = emb_flat.reshape(batch_size, n_comments, H)       # (B, N, H)
    return attention_and_classify(
        comment_emb, active_mask,
        params["wa"], params["ba"], params["va"],
        params["wc"], params["bc"],
    )


# ----------------------------------------------------------------------------
# Pure-JAX reference (mirrors the PyTorch forward, eval mode)
# ----------------------------------------------------------------------------
def reference_forward(hidden_states, token_mask, active_mask, params, B, N):
    L, M, S, H = hidden_states.shape
    hs = hidden_states.astype(jnp.float32)
    mk = token_mask[..., None]                                   # (M, S, 1)
    summed = jnp.sum(hs * mk[None], axis=2)                      # (L, M, H)
    cnt = jnp.clip(jnp.sum(mk, axis=1), 1e-9)                    # (M, 1)
    pooled = summed / cnt[None]                                  # (L, M, H)
    emb_flat = jnp.mean(pooled, axis=0)                          # (M, H)
    emb = emb_flat.reshape(B, N, H)

    u = jnp.tanh(emb @ params["wa"] + params["ba"][0])           # (B, N, A)
    scores = (u @ params["va"])[..., 0]                          # (B, N)
    scores = jnp.where(active_mask > 0.5, scores, -1e9)
    w = jax.nn.softmax(scores, axis=1)[..., None]                # (B, N, 1)
    agg = jnp.sum(w * emb, axis=1)                               # (B, H)
    return agg @ params["wc"] + params["bc"][0]                  # (B, TK)


if __name__ == "__main__":
    # small, module-consistent shapes
    B, N, S, H = 2, 3, 8, 32          # batch, comments, seq, bert hidden
    L = 4                             # num_bert_layers_to_pool
    A = 32                            # attention_hidden_dim
    T, K = 5, 5                       # num_traits, ordinal_values_per_trait
    TK = T * (K - 1)                  # binary classifiers total
    M = B * N

    key = jax.random.PRNGKey(0)
    k = jax.random.split(key, 8)

    # synthesized BERT hidden states (stand-in for the pretrained encoder),
    # streamed in bf16: the pool kernel is HBM-bandwidth bound and keeps an
    # f32 accumulator internally.
    hidden_states = jax.random.normal(
        k[0], (L, M, S, H), dtype=jnp.float32).astype(jnp.bfloat16)

    # token attention mask: (M, S), first half of the sequence active
    token_mask = (jnp.arange(S)[None, :] < (S // 2 + 1)).astype(jnp.float32)
    token_mask = jnp.broadcast_to(token_mask, (M, S))

    # comment active mask: (B, N), first 2 of 3 comments active
    active_mask = (jnp.arange(N)[None, :] < 2).astype(jnp.float32)
    active_mask = jnp.broadcast_to(active_mask, (B, N))

    # deterministic parameters (attention_w, attention_v, trait classifiers)
    params = {
        "wa": 0.1 * jax.random.normal(k[1], (H, A), dtype=jnp.float32),
        "ba": 0.1 * jax.random.normal(k[2], (1, A), dtype=jnp.float32),
        "va": 0.1 * jax.random.normal(k[3], (A, 1), dtype=jnp.float32),
        # T trait heads of (H, K-1) each, concatenated along the output dim
        "wc": 0.1 * jax.random.normal(k[4], (H, TK), dtype=jnp.float32),
        "bc": 0.1 * jax.random.normal(k[5], (1, TK), dtype=jnp.float32),
    }

    logits = personality_model_v2_forward(
        hidden_states, token_mask, active_mask, params, B, N)
    logits = jax.block_until_ready(logits)

    ref = reference_forward(hidden_states, token_mask, active_mask, params, B, N)
    assert logits.shape == (B, TK), logits.shape
    # approx reciprocal remains only in the softmax denominator -> modest tol
    assert jnp.allclose(logits, ref, rtol=2e-3, atol=2e-3), (
        jnp.max(jnp.abs(logits - ref)))
    print("KERNEL_OK")
</pallas_src>

<mosaic_0001>
module attributes {stable_mosaic.version = 11 : i64} {
  func.func @pool_kernel(%arg0: i32, %arg1: i32, %arg2: memref<1x8x8x32xbf16, #tpu.memory_space<vmem>>, %arg3: memref<8x8xf32, #tpu.memory_space<vmem>>, %arg4: memref<8x32xf32, #tpu.memory_space<vmem>>, %arg5: memref<8x32xf32, #tpu.memory_space<vmem>>) attributes {dimension_semantics = [#tpu.dimension_semantics<parallel>, #tpu.dimension_semantics<arbitrary>], iteration_bounds = array<i64: 1, 4>, scalar_prefetch = 0 : i64, scratch_operands = 1 : i64, tpu.core_type = #tpu.core_type<tc>, window_params = [{transform_indices = @transform_0, window_bounds = array<i64: 1, 8, 8, 32>}, {transform_indices = @transform_1, window_bounds = array<i64: 8, 8>}, {transform_indices = @transform_2, window_bounds = array<i64: 8, 32>}]} {
    %c0_i32 = arith.constant 0 : i32
    %0 = arith.cmpi eq, %arg1, %c0_i32 : i32
    %1 = arith.extui %0 : i1 to i32
    %c0_i32_0 = arith.constant 0 : i32
    %2 = arith.cmpi ne, %1, %c0_i32_0 : i32
    scf.if %2 {
      %cst_11 = arith.constant 0.000000e+00 : f32
      %17 = vector.broadcast %cst_11 : f32 to vector<8x32xf32>
      %c0_12 = arith.constant 0 : index
      %c0_13 = arith.constant 0 : index
      %18 = vector.load %arg5[%c0_12, %c0_13] : memref<8x32xf32, #tpu.memory_space<vmem>>, vector<8x32xf32>
      tpu.vector_store %arg5[%c0_12, %c0_13], %17 {strides = array<i32>} : memref<8x32xf32, #tpu.memory_space<vmem>>, vector<8x32xf32>,
    } else {
    }
    %c0 = arith.constant 0 : index
    %c0_1 = arith.constant 0 : index
    %c0_2 = arith.constant 0 : index
    %c0_3 = arith.constant 0 : index
    %3 = vector.load %arg2[%c0, %c0_1, %c0_2, %c0_3] : memref<1x8x8x32xbf16, #tpu.memory_space<vmem>>, vector<1x8x8x32xbf16>
    %4 = vector.shape_cast %3 : vector<1x8x8x32xbf16> to vector<8x8x32xbf16>
    %5 = arith.extf %4 : vector<8x8x32xbf16> to vector<8x8x32xf32>
    %c0_4 = arith.constant 0 : index
    %c0_5 = arith.constant 0 : index
    %6 = vector.load %arg3[%c0_4, %c0_5] : memref<8x8xf32, #tpu.memory_space<vmem>>, vector<8x8xf32>
    %7 = vector.shape_cast %6 : vector<8x8xf32> to vector<8x8x1xf32>
    %c0_6 = arith.constant 0 : index
    %c0_7 = arith.constant 0 : index
    %8 = vector.load %arg5[%c0_6, %c0_7] : memref<8x32xf32, #tpu.memory_space<vmem>>, vector<8x32xf32>
    %9 = vector.broadcast %7 : vector<8x8x1xf32> to vector<8x8x32xf32>
    %10 = arith.mulf %5, %9 : vector<8x8x32xf32>
    %cst = arith.constant dense<0.000000e+00> : vector<8x32xf32>
    %11 = vector.multi_reduction <add>, %10, %cst [1] : vector<8x8x32xf32> to vector<8x32xf32>
    %12 = arith.addf %8, %11 : vector<8x32xf32>
    %c0_8 = arith.constant 0 : index
    %c0_9 = arith.constant 0 : index
    %13 = vector.load %arg5[%c0_8, %c0_9] : memref<8x32xf32, #tpu.memory_space<vmem>>, vector<8x32xf32>
    tpu.vector_store %arg5[%c0_8, %c0_9], %12 {strides = array<i32>} : memref<8x32xf32, #tpu.memory_space<vmem>>, vector<8x32xf32>,
    %c3_i32 = arith.constant 3 : i32
    %14 = arith.cmpi eq, %arg1, %c3_i32 : i32
    %15 = arith.extui %14 : i1 to i32
    %c0_i32_10 = arith.constant 0 : i32
    %16 = arith.cmpi ne, %15, %c0_i32_10 : i32
    scf.if %16 {
      %c0_11 = arith.constant 0 : index
      %c0_12 = arith.constant 0 : index
      %17 = vector.load %arg3[%c0_11, %c0_12] : memref<8x8xf32, #tpu.memory_space<vmem>>, vector<8x8xf32>
      %cst_13 = arith.constant dense<0.000000e+00> : vector<8xf32>
      %18 = vector.multi_reduction <add>, %17, %cst_13 [1] : vector<8x8xf32> to vector<8xf32>
      %19 = vector.shape_cast %18 : vector<8xf32> to vector<8x1xf32>
      %cst_14 = arith.constant 9.99999971E-10 : f32
      %20 = vector.broadcast %cst_14 : f32 to vector<8x1xf32>
      %21 = arith.maximumf %19, %20 : vector<8x1xf32>
      %c0_15 = arith.constant 0 : index
      %c0_16 = arith.constant 0 : index
      %22 = vector.load %arg5[%c0_15, %c0_16] : memref<8x32xf32, #tpu.memory_space<vmem>>, vector<8x32xf32>
      %cst_17 = arith.constant 4.000000e+00 : f32
      %23 = vector.broadcast %cst_17 : f32 to vector<8x1xf32>
      %24 = arith.mulf %21, %23 : vector<8x1xf32>
      %25 = vector.broadcast %24 : vector<8x1xf32> to vector<8x32xf32>
      %26 = arith.divf %22, %25 : vector<8x32xf32>
      %c0_18 = arith.constant 0 : index
      %c0_19 = arith.constant 0 : index
      %27 = vector.load %arg4[%c0_18, %c0_19] : memref<8x32xf32, #tpu.memory_space<vmem>>, vector<8x32xf32>
      tpu.vector_store %arg4[%c0_18, %c0_19], %26 {strides = array<i32>} : memref<8x32xf32, #tpu.memory_space<vmem>>, vector<8x32xf32>,
    } else {
    }
    return
  }
  func.func @transform_0(%arg0: i32, %arg1: i32) -> (i32, i32, i32, i32) {
    %c0_i32 = arith.constant 0 : i32
    %c0_i32_0 = arith.constant 0 : i32
    %c0_i32_1 = arith.constant 0 : i32
    return %arg1, %arg0, %c0_i32, %c0_i32_0 : i32, i32, i32, i32
  }
  func.func @transform_1(%arg0: i32, %arg1: i32) -> (i32, i32) {
    %c0_i32 = arith.constant 0 : i32
    %c0_i32_0 = arith.constant 0 : i32
    return %arg0, %c0_i32 : i32, i32
  }
  func.func @transform_2(%arg0: i32, %arg1: i32) -> (i32, i32) {
    %c0_i32 = arith.constant 0 : i32
    %c0_i32_0 = arith.constant 0 : i32
    return %arg0, %c0_i32 : i32, i32
  }
}

</mosaic_0001>

<bundles_post_ra>
// kernel: tpu_custom_call.1
= control target key start
LH: loop header
LB: loop body
LE: loop exit
PB: predicated region body
PF: predicated region fallthrough
CT: control target
= control target key end

     0   :  { %7 = vsyncpa [#allocation4], 0  ;;  %s954_s0 = inlined_call_operand.hbm [shape: bf16[4,8,8,32], index: 0, kind: input, shape index: {}]   ;;  %s955_s1 = inlined_call_operand.hbm [shape: f32[8,8], index: 1, kind: input, shape index: {}]   ;;  %s956_s2 = inlined_call_operand.hbm [shape: f32[8,32], index: 2, kind: output, shape index: {}]  }
   0x1   :  { %9 = vsyncpa [#allocation4 + $0x1], 0 }
   0x2   :  { %10 = vsyncpa [#allocation7], 0 }
   0x3   :  { %11 = vsyncpa [#allocation5], 0  ;;  %s741_s9 = smov 0   ;;  %s743_s10 = smov 0  }
   0x4   :  { %s745_s11 = smov 0   ;;  %s747_s12 = smov 0  }
   0x5   :  { %s749_s13 = smov 0   ;;  %s751_s14 = smov 0  }
   0x6 LB: > { %s462_s15 = sadd.s32 4294967295, %s718_s14   ;;  %s38_s16 = sadd.s32 1, %s706_s11  ;;  %s718_s14 = sphi %s751_s14, %s17_s14   ;;  %s714_s13 = sphi %s749_s13, %s977_s13   ;;  %s710_s12 = sphi %s747_s12, %s976_s12   ;;  %s706_s11 = sphi %s745_s11, %s975_s11   ;;  %s702_s10 = sphi %s743_s10, %s974_s10   ;;  %s698_s9 = sphi %s741_s9, %s973_s9  }
   0x7   : > { %p45_p0 = scmp.ne.s32.totalorder %s706_s11, %s702_s10  ;;  %p46_p1 = scmp.eq.s32.totalorder %s718_s14, 0 }
   0x8   : > { %p51_p2 = scmp.ne.s32.totalorder %s702_s10, %s698_s9  ;;  %p777_p3 = scmp.eq.s32.totalorder %s462_s15, 0 }
   0x9   : > { %p47_p4 = por %p46_p1, %p45_p0  ;;  %p463_p5 = scmp.ge.s32.totalorder %s718_s14, 1 }
   0xa   : > { %s962_s17 = scalar_select %p777_p3, 1, 0 }
   0xb   : > { %p784_p6 = por %p777_p3, %p51_p2  ;;  %p114_p7 = scmp.lt.s32.totalorder %s718_s14, 5 }
   0xc   : > { %s720_s20 = smov [#allocation6]   ;;  %p517_p10 = scmp.lt.s32.totalorder %s718_s14, 4 }
   0xd   : > { %s963_s18 = scalar_select %p784_p6, 1, 0 }
   0xe   : > { %p789_p8 = pnand %p463_p5, %p114_p7  ;;  %s129_s21 = sshll.u32 %s720_s20, 4  ;;  %s130_s21 = int_to_ptr.vmem [resolvable:$true] %s129_s21 }
   0xf   : > { %s140_s22 = sand.u32 1, %s706_s11   ;;  %p803_p12 = pnand %p517_p10, %p47_p4 }
  0x10   : > { %s964_s19 = scalar_select %p789_p8, 1, 0 }
  0x11   : > { %p508_p9 = pneg %p789_p8  ;;  %s576_s27 = scalar_lea.hbm %s955_s1, 128 }
  0x12   : > { %s966_s24 = scalar_select %p803_p12, 1, 0 }
  0x13   : > { %p799_p11 = pnand %p508_p9, %p777_p3  ;;  %p577_p13 = scmp.ne.s32.totalorder %s955_s1, %s576_s27 }
  0x14   : > { %p583_p5 = scmp.lt.u32.totalorder %s576_s27, %s955_s1 }
  0x15   : > { %p578_p0 = pneg %p799_p11 }
  0x17   : > { %p579_p1 = pnand %p578_p0, %p577_p13 }
  0x19   : > { %p580_p2 = pneg %p579_p1 }
  0x1b   : > { %p585_p4 = pnand %p583_p5, %p580_p2 }
  0x1d   : > { %588 = shalt.err (!%p585_p4)
}
  0x1e   : > { %s589_s4 = scalar_lea.vmem %s130_s21, 128  ;;  %p597_p3 = scmp.lt.s32.totalorder %s130_s21, %s130_s21 }
  0x1f   : > { %p590_p7 = scmp.ne.s32.totalorder %s130_s21, %s589_s4  ;;  %p598_p6 = scmp.lt.s32.totalorder %s589_s4, %s589_s4 }
  0x21   : > { %p592_p9 = pnand %p590_p7, %p578_p0  ;;  %p599_p8 = por %p598_p6, %p597_p3 }
  0x23   : > { %p593_p10 = pneg %p592_p9 }
  0x25   : > { %p600_p12 = pnand %p599_p8, %p593_p10 }
  0x27   : > { %603 = shalt.err (!%p600_p12)
}
  0x28   : > { %511 = dma.hbm_to_vmem [thread:$0]  (!%p799_p11), %s955_s1, 128, %s130_s21, [#allocation7]  }
  0x29   : > { %s26_s7 = sadd.s32 1, %s714_s13  ;;  %s466_s8 = sshll.u32 %s140_s22, 5 }
  0x2a   : > { %p27_p13 = scmp.ge.s32.totalorder %s26_s7, 4  ;;  %s478_s9 = sshll.u32 %s714_s13, 9 }
  0x2b   : > { %s144_s20 = scalar_lea.vmem [#allocation3], %s466_s8  ;;  %s832_s27 = scalar_lea.hbm %s954_s0, %s478_s9 }
  0x2c   : > { %s153_s25 = sshll.u32 %s144_s20, 4  ;;  %s979_s7 = smov (%p27_p13, %s26_s7), 0  ;;  %s834_s25 = int_to_ptr.vmem [resolvable:$true] %s153_s25 }
  0x2d   : > { %s33_s21 = ssub.s32 %s714_s13, %s979_s7  ;;  %s844_s29 = scalar_lea.sflag [#allocation4], %s140_s22 }
  0x2e   : > { %p838_p3 = scmp.eq.s32.totalorder %s33_s21, 0  ;;  %s604_s30 = scalar_lea.hbm %s832_s27, 512 }
  0x2f   : > { %p605_p6 = scmp.ne.s32.totalorder %s832_s27, %s604_s30  ;;  %p968_p8 = scmp.ne.s32.totalorder %s966_s24, 0 }
  0x30   : > { %s609_s5 = scalar_lea.hbm %s954_s0, 2048  ;;  %p610_p1 = scmp.lt.u32.totalorder %s832_s27, %s954_s0 }
  0x31   : > { %p606_p11 = pneg %p968_p8  ;;  %p611_p2 = scmp.lt.u32.totalorder %s609_s5, %s604_s30 }
  0x32   : > { %p613_p4 = scmp.lt.u32.totalorder %s604_s30, %s832_s27 }
  0x33   : > { %p607_p12 = pnand %p606_p11, %p605_p6  ;;  %p612_p5 = por %p611_p2, %p610_p1 }
  0x35   : > { %p608_p0 = pneg %p607_p12  ;;  %p614_p7 = por %p613_p4, %p612_p5 }
  0x37   : > { %p615_p9 = pnand %p614_p7, %p608_p0 }
  0x39   : > { %618 = shalt.err (!%p615_p9)
}
  0x3a   : > { %s619_s22 = scalar_lea.vmem %s834_s25, 512  ;;  %s721_s9 = smov [#allocation3]  }
  0x3b   : > { %p620_p10 = scmp.ne.s32.totalorder %s834_s25, %s619_s22  ;;  %s624_s20 = sshll.u32 %s721_s9, 4  ;;  %s625_s20 = int_to_ptr.vmem [resolvable:$false] %s624_s20 }
  0x3c   : > { %s626_s23 = scalar_lea.vmem %s625_s20, 1024  ;;  %p627_p12 = scmp.lt.s32.totalorder %s834_s25, %s625_s20 }
  0x3d   : > { %p622_p13 = pnand %p620_p10, %p606_p11  ;;  %p628_p1 = scmp.lt.s32.totalorder %s626_s23, %s619_s22 }
  0x3f   : > { %p623_p6 = pneg %p622_p13  ;;  %p629_p2 = por %p628_p1, %p627_p12 }
  0x41   : > { %p630_p5 = pnand %p629_p2, %p623_p6 }
  0x43   : > { %633 = shalt.err (!%p630_p5)
}
  0x44   : > { %s722_s26 = smov 64   ;;  %s723_s21 = smov 4  }
  0x45   : > { %515 = dma.hbm_to_vmem [thread:$0]  (!%p968_p8), %s832_s27, 512, %s834_s25, %s844_s29, %s722_s26, %s722_s26, %s723_s21  }
  0x46   : > { %s877_s30 = scalar_select %p838_p3, %s706_s11, %s38_s16  }
  0x47   : > { %p969_p11 = scmp.ne.s32.totalorder %s964_s19, 0 }
  0x48   : > { %s167_s3 = sand.u32 (!%p969_p11), 1, %s702_s10   ;;  %p970_p0 = scmp.ne.s32.totalorder (!%p969_p11), %s963_s18, 0 }
  0x49   : > { %165 = sbr.rel (%p969_p11) target bundleno = 412 (0x19c), region = 28  ;;  %s470_s4 = sshll.u32 (!%p969_p11), %s167_s3, 5 }
  0x4a   : > { %s168_s5 = scalar_lea.sflag (!%p969_p11), [#allocation4], %s167_s3  ;;  %s882_s6 = scalar_lea.vmem (!%p969_p11), [#allocation3], %s470_s4 }
  0x50   : > { %685 = dma.done.wait (%p970_p0), %s168_s5, 512  }
  0x51   : > { %687 = vsyncadd (%p970_p0), %s168_s5, 4294966784  ;;  %p971_p8 = scmp.ne.s32.totalorder %s962_s17, 0 }
  0x53   : > { %689 = dma.done.wait (%p971_p8), [#allocation7], 128  }
  0x54   : > { %691 = vsyncadd (%p971_p8), [#allocation7], 4294967168  ;;  %p472_p3 = scmp.ne.s32.totalorder %s710_s12, 0 }
  0x55   : > { %vm196_vm0 = vcmask (!%p472_p3), 261120   ;;  %v724_v0 = vmov (!%p472_p3), 0.0  }
  0x56   : > { %195 = sbr.rel (%p472_p3) target bundleno = 93 (0x5d), region = 40  ;;  %197 = vst.msk [vmem:[#allocation2] sm:$0xff] (!%p472_p3), %vm196_vm0, %v724_v0 }
  0x5d PF: > { %v215_v1 = vlaneseq  ;;  %v214_v3 = vld [vmem:[#allocation6] sm:$0xff]  ;;  %v495_v20 = vld [vmem:[%s882_s6 + $0x8] sm:$0xff]   ;;  %vm280_vm1 = vcmask 261120   ;;  %v496_v30 = vld [vmem:[%s882_s6 + $0x10] sm:$0xff]   ;;  %vm345_vm2 = vcmask 1041409   ;;  %vm347_vm3 = vcmask 1042434  }
  0x5e   : > { %v480_v21 = vld [vmem:[%s882_s6] sm:$0xff]   ;;  %v485_v22 = vunpack.c.l.bf16 %v495_v20  ;;  %v486_v28 = vunpack.c.h.bf16 %v495_v20  ;;  %v490_v39 = vunpack.c.h.bf16 %v496_v30  ;;  %v489_v40 = vunpack.c.l.bf16 %v496_v30  ;;  %v497_v43 = vld [vmem:[%s882_s6 + $0x18] sm:$0xff]   ;;  %p473_p4 = scmp.ne.s32.totalorder %s710_s12, 3 }
  0x5f   : > { %v216_v2 = vshrl.u32 %v215_v1, 7  ;;  %v481_v23 = vunpack.c.l.bf16 %v480_v21  ;;  %v482_v29 = vunpack.c.h.bf16 %v480_v21  ;;  %v494_v54 = vunpack.c.h.bf16 %v497_v43 }
  0x60   : > { %v493_v55 = vunpack.c.l.bf16 %v497_v43  ;;  %vm349_vm4 = vcmask 1043459   ;;  %vm351_vm5 = vcmask 1044484   ;;  %vm353_vm6 = vcmask 1045509  }
  0x61   : > { %v231_v4 = vsub.s32 2, %v216_v2  ;;  %v217_v5 = vsub.s32 0, %v216_v2  ;;  %v238_v6 = vsub.s32 3, %v216_v2  ;;  %v224_v7 = vsub.s32 1, %v216_v2 }
  0x62   : > { %v252_v12 = vsub.s32 5, %v216_v2  ;;  %v245_v13 = vsub.s32 4, %v216_v2  ;;  %v266_v16 = vsub.s32 7, %v216_v2  ;;  %v259_v17 = vsub.s32 6, %v216_v2 }
  0x63   : > { %v232_v8 = vrot.slane %v214_v3, %v231_v4  ;;  %v218_v9 = vrot.slane %v214_v3, %v217_v5  ;;  %v239_v10 = vrot.slane %v214_v3, %v238_v6  ;;  %v225_v11 = vrot.slane %v214_v3, %v224_v7 }
  0x64   : > { %v253_v14 = vrot.slane %v214_v3, %v252_v12  ;;  %v246_v15 = vrot.slane %v214_v3, %v245_v13  ;;  %v267_v18 = vrot.slane %v214_v3, %v266_v16  ;;  %v260_v19 = vrot.slane %v214_v3, %v259_v17 }
  0x65   : > { %234 = vbcast.lane.b32.xlu1 %v232_v8, 256  ;;  %220 = vbcast.lane.b32.xlu0 %v218_v9, 256  ;;  %vm355_vm7 = vcmask 1046534   ;;  %vm357_vm8 = vcmask 1047559   ;;  %vm367_vm9 = vcmask (!%p473_p4), 64512  }
  0x69   : > { %241 = vbcast.lane.b32.xlu1 %v239_v10, 256  ;;  %227 = vbcast.lane.b32.xlu0 %v225_v11, 256 }
  0x6d   : > { %255 = vbcast.lane.b32.xlu1 %v253_v14, 256  ;;  %248 = vbcast.lane.b32.xlu0 %v246_v15, 256 }
  0x71   : > { %269 = vbcast.lane.b32.xlu1 %v267_v18, 256  ;;  %262 = vbcast.lane.b32.xlu0 %v260_v19, 256 }
  0xd7   : > { %v235_v24 = vpop.permute.xlu1 %234  ;;  %v221_v25 = vpop.permute.xlu0 %220 }
  0xd8   : > { %v274_v26 = vmul.f32 %v485_v22, %v235_v24  ;;  %v272_v27 = vmul.f32 %v481_v23, %v221_v25 }
  0xda   : > { %v295_v31 = vsel %vm280_vm1, %v274_v26, 0.0  ;;  %v281_v32 = vsel %vm280_vm1, %v272_v27, 0.0 }
  0xdb   : > { %v296_v33 = vrot.slane %v295_v31, 4  ;;  %v282_v34 = vrot.slane %v281_v32, 4  ;;  %v242_v35 = vpop.permute.xlu1 %241  ;;  %v228_v36 = vpop.permute.xlu0 %227 }
  0xdc   : > { %v275_v37 = vmul.f32 %v486_v28, %v242_v35  ;;  %v273_v38 = vmul.f32 %v482_v29, %v228_v36 }
  0xdd   : > { %v297_v41 = vadd.f32 %v296_v33, %v295_v31  ;;  %v283_v42 = vadd.f32 %v282_v34, %v281_v32 }
  0xde   : > { %v302_v44 = vsel %vm280_vm1, %v275_v37, 0.0  ;;  %v288_v45 = vsel %vm280_vm1, %v273_v38, 0.0 }
  0xdf   : > { %v298_v46 = vrot.slane %v297_v41, 2  ;;  %v284_v47 = vrot.slane %v283_v42, 2  ;;  %v303_v48 = vrot.slane %v302_v44, 4  ;;  %v289_v49 = vrot.slane %v288_v45, 4  ;;  %v256_v50 = vpop.permute.xlu1 %255  ;;  %v249_v51 = vpop.permute.xlu0 %248 }
  0xe0   : > { %v277_v52 = vmul.f32 %v490_v39, %v256_v50  ;;  %v276_v53 = vmul.f32 %v489_v40, %v249_v51 }
  0xe1   : > { %v299_v56 = vadd.f32 %v298_v46, %v297_v41  ;;  %v285_v57 = vadd.f32 %v284_v47, %v283_v42  ;;  %v304_v58 = vadd.f32 %v303_v48, %v302_v44  ;;  %v290_v59 = vadd.f32 %v289_v49, %v288_v45  ;;  %v271_v44 = vld [vmem:[#allocation2] sm:$0xff]  ;;  %v366_v49 = vld [vmem:[#allocation6] sm:$0xff] (!%p473_p4) }
  0xe2   : > { %v316_v60 = vsel %vm280_vm1, %v277_v52, 0.0  ;;  %v309_v61 = vsel %vm280_vm1, %v276_v53, 0.0  ;;  %v368_v50 = vsel (!%p473_p4), %vm367_vm9, %v366_v49, 0.0 }
  0xe3   : > { %v305_v62 = vrot.slane %v304_v58, 2  ;;  %v291_v63 = vrot.slane %v290_v59, 2  ;;  %v270_v0 = vpop.permute.xlu1 %269  ;;  %v263_v1 = vpop.permute.xlu0 %262  ;;  %v317_v2 = vrot.slane %v316_v60, 4  ;;  %v310_v3 = vrot.slane %v309_v61, 4  ;;  %369 = vadd.xlane.f32.xlu0 (!%p473_p4), %v368_v50 }
  0xe4   : > { %v279_v4 = vmul.f32 %v494_v54, %v270_v0  ;;  %v278_v5 = vmul.f32 %v493_v55, %v263_v1  ;;  %v300_v6 = vrot.slane %v299_v56, 1  ;;  %v286_v7 = vrot.slane %v285_v57, 1 }
  0xe5   : > { %v306_v8 = vadd.f32 %v305_v62, %v304_v58  ;;  %v292_v9 = vadd.f32 %v291_v63, %v290_v59  ;;  %v318_v10 = vadd.f32 %v317_v2, %v316_v60  ;;  %v311_v11 = vadd.f32 %v310_v3, %v309_v61 }
  0xe6   : > { %v330_v12 = vsel %vm280_vm1, %v279_v4, 0.0  ;;  %v323_v13 = vsel %vm280_vm1, %v278_v5, 0.0  ;;  %v287_v20 = vadd.f32 %v286_v7, %v285_v57  ;;  %v301_v24 = vadd.f32 %v300_v6, %v299_v56 }
  0xe7   : > { %v307_v14 = vrot.slane %v306_v8, 1  ;;  %v293_v15 = vrot.slane %v292_v9, 1  ;;  %v331_v16 = vrot.slane %v330_v12, 4  ;;  %v324_v17 = vrot.slane %v323_v13, 4 }
  0xe8   : > { %v319_v18 = vrot.slane %v318_v10, 2  ;;  %v312_v19 = vrot.slane %v311_v11, 2 }
  0xe9   : > { %v294_v21 = vadd.f32 %v293_v15, %v292_v9  ;;  %v332_v22 = vadd.f32 %v331_v16, %v330_v12  ;;  %v325_v23 = vadd.f32 %v324_v17, %v323_v13  ;;  %v308_v27 = vadd.f32 %v307_v14, %v306_v8 }
  0xea   : > { %v320_v25 = vadd.f32 %v319_v18, %v318_v10  ;;  %v313_v26 = vadd.f32 %v312_v19, %v311_v11 }
  0xeb   : > { %v346_v28 = vsel %vm345_vm2, %v294_v21, %v287_v20  ;;  %v333_v29 = vrot.slane %v332_v22, 2  ;;  %v326_v30 = vrot.slane %v325_v23, 2 }
  0xec   : > { %v348_v31 = vsel %vm347_vm3, %v301_v24, %v346_v28  ;;  %v321_v32 = vrot.slane %v320_v25, 1  ;;  %v314_v33 = vrot.slane %v313_v26, 1 }
  0xed   : > { %v350_v34 = vsel %vm349_vm4, %v308_v27, %v348_v31  ;;  %v334_v35 = vadd.f32 %v333_v29, %v332_v22  ;;  %v327_v36 = vadd.f32 %v326_v30, %v325_v23 }
  0xee   : > { %v322_v37 = vadd.f32 %v321_v32, %v320_v25  ;;  %v315_v38 = vadd.f32 %v314_v33, %v313_v26 }
  0xef   : > { %v335_v39 = vrot.slane %v334_v35, 1  ;;  %v328_v40 = vrot.slane %v327_v36, 1 }
  0xf0   : > { %v352_v41 = vsel %vm351_vm5, %v315_v38, %v350_v34 }
  0xf1   : > { %v336_v42 = vadd.f32 %v335_v39, %v334_v35  ;;  %v329_v43 = vadd.f32 %v328_v40, %v327_v36  ;;  %v354_v45 = vsel %vm353_vm6, %v322_v37, %v352_v41  ;;  %365 = sbr.rel (%p473_p4) target bundleno = 387 (0x183), region = 44 }
  0xf3   : > { %v356_v46 = vsel %vm355_vm7, %v329_v43, %v354_v45 }
  0xf4   : > { %v358_v47 = vsel %vm357_vm8, %v336_v42, %v356_v46 }
  0xf5   : > { %v360_v48 = vadd.f32 %v358_v47, %v271_v44 }
  0xf7   : > { %361 = vst.msk [vmem:[#allocation2] sm:$0xff] %vm280_vm1, %v360_v48 }
  0xfe   : > { %v372_v54 = vld [vmem:[#allocation2] sm:$0xff] }
 0x170   : > { %v370_v51 = vpop.xlane.xlu0 %369 }
 0x171   : > { %v371_v52 = vmax.f32 %v370_v51, 1e-09 }
 0x173   : > { %v373_v53 = vmul.f32 4.0, %v371_v52 }
 0x175   : > { %574 = vrcp.f32 %v373_v53 }
 0x17f   : > { %v575_v55 = vpop.eup %574 }
 0x180   : > { %v375_v56 = vmul.f32 %v575_v55, %v372_v54 }
 0x182   : > { %376 = vst.msk [vmem:[#allocation8] sm:$0xff] %vm280_vm1, %v375_v56 }
 0x183 PF: > { %p910_p7 = scmp.eq.s32.totalorder %s462_s15, 3  ;;  %s725_s12 = smov [#allocation8]  }
 0x184   : > { %s386_s17 = sshll.u32 %s725_s12, 4  ;;  %s387_s17 = int_to_ptr.vmem [resolvable:$true] %s386_s17 }
 0x185   : > { %s634_s18 = scalar_lea.vmem %s387_s17, 128  ;;  %p641_p6 = scmp.lt.s32.totalorder %s387_s17, %s387_s17 }
 0x186   : > { %p635_p9 = scmp.ne.s32.totalorder %s387_s17, %s634_s18  ;;  %p642_p12 = scmp.lt.s32.totalorder %s634_s18, %s634_s18 }
 0x188   : > { %p636_p10 = pnand %p635_p9, %p910_p7  ;;  %p643_p1 = por %p642_p12, %p641_p6 }
 0x18a   : > { %p637_p13 = pneg %p636_p10 }
 0x18c   : > { %p644_p2 = pnand %p643_p1, %p637_p13 }
 0x18e   : > { %647 = shalt.err (!%p644_p2)
}
 0x18f   : > { %s648_s15 = scalar_lea.hbm %s956_s2, 128 }
 0x190   : > { %p649_p5 = scmp.ne.s32.totalorder %s956_s2, %s648_s15  ;;  %p654_p8 = scmp.lt.u32.totalorder %s648_s15, %s956_s2 }
 0x192   : > { %p650_p11 = pnand %p649_p5, %p910_p7 }
 0x194   : > { %p651_p0 = pneg %p650_p11 }
 0x196   : > { %p656_p3 = pnand %p654_p8, %p651_p0 }
 0x198   : > { %659 = shalt.err (!%p656_p3)
}
 0x199   : > { %505 = dma.vmem_to_hbm [thread:$0]  (%p910_p7), %s387_s17, 128, %s956_s2, [#allocation5]  }
 0x19a   : > { %693 = dma.done.wait (%p910_p7), [#allocation5], 128  }
 0x19b   : > { %695 = vsyncadd (%p910_p7), [#allocation5], 4294967168 }
 0x19c PF: > { %s17_s14 = sadd.s32 1, %s718_s14   ;;  %s973_s9 = smov %s702_s10 }
 0x19d   : > { %p14_p4 = scmp.ge.s32.totalorder %s17_s14, 6   ;;  %s974_s10 = smov %s706_s11 }
 0x19e   : > { %s975_s11 = smov %s877_s30  ;;  %s976_s12 = smov %s714_s13 }
 0x19f   : > { %s977_s13 = smov %s979_s7  ;;  %16 = sbr.rel (!%p14_p4) target bundleno = 6 (0x6), region = 79 }
 0x1a6   :  { %399 = vsyncpa [#allocation4], 1 }
 0x1a7   :  { %401 = vsyncpa [#allocation4 + $0x1], 1 }
 0x1a8   :  { %402 = vsyncpa [#allocation7], 1 }
 0x1a9   :  { %403 = vsyncpa [#allocation5], 1 }
 0x1aa   :  { %405 = vsyncpa [#allocation5 + $0x1], 1 }

</bundles_post_ra>
